<compile_context>
chip_gen: v6e
topology: v6e:2x2x1
jax: 0.10.0
libtpu: 0.0.40
codegen_flags: <defaults>
</compile_context>

<pallas_src>
import jax
import jax.numpy as jnp
from jax.experimental import pallas as pl
from jax.experimental.pallas import tpu as pltpu


def _autoencoder_kernel(x_ref, w1_ref, b1_ref, w2_ref, b2_ref, out_ref):
    # In-kernel cast: x streams in its native dtype; cast is hidden under DMA.
    x = x_ref[...].astype(jnp.float32)
    # encoder: Linear + ReLU
    code = jnp.maximum(
        jnp.dot(x, w1_ref[...], preferred_element_type=jnp.float32) + b1_ref[...],
        0.0,
    )
    # decoder: Linear + ReLU
    out = jnp.maximum(
        jnp.dot(code, w2_ref[...], preferred_element_type=jnp.float32) + b2_ref[...],
        0.0,
    )
    out_ref[...] = out.astype(out_ref.dtype)


def _round_up(x, m):
    return ((x + m - 1) // m) * m


def prepare_params(w_enc, b_enc, w_dec, b_dec):
    """One-time (model-init) parameter prep: transpose + cast + lane padding.

    Inputs follow torch.nn.Linear conventions:
      w_enc: (hidden, num_items), b_enc: (hidden,)
      w_dec: (num_items, hidden), b_dec: (num_items,)
    num_items is zero-padded to a multiple of 128 so the output last dim is
    lane-dense (unmasked stores).  Do NOT call per forward pass.
    """
    hidden, num_items = w_enc.shape
    ni_p = _round_up(num_items, 128)

    w1 = jnp.asarray(w_enc, jnp.float32).T          # (num_items, hidden)
    w2 = jnp.asarray(w_dec, jnp.float32).T          # (hidden, num_items)
    b1 = jnp.asarray(b_enc, jnp.float32).reshape(1, hidden)
    b2 = jnp.asarray(b_dec, jnp.float32).reshape(1, num_items)

    if ni_p != num_items:
        # Zero-padded extra item columns: zero weights + zero bias -> relu(0)=0,
        # and padded x columns hit zero encoder rows, so semantics are unchanged.
        w1 = jnp.pad(w1, ((0, ni_p - num_items), (0, 0)))
        w2 = jnp.pad(w2, ((0, 0), (0, ni_p - num_items)))
        b2 = jnp.pad(b2, ((0, 0), (0, ni_p - num_items)))

    return {
        "w1": w1, "b1": b1, "w2": w2, "b2": b2,
        "num_items": num_items, "num_items_padded": ni_p, "hidden": hidden,
    }


def expl_autoencoder_forward(x, params, *, max_batch_tile=1024,
                             io_vmem_budget_bytes=12 << 20):
    """x: (B, num_items) user-adjusted ratings; params from prepare_params()."""
    w1, b1, w2, b2 = params["w1"], params["b1"], params["w2"], params["b2"]
    num_items = params["num_items"]
    ni_p = params["num_items_padded"]
    hidden = params["hidden"]

    B = x.shape[0]
    if B < 1:
        raise ValueError("expl_autoencoder_forward requires batch >= 1")

    item_padded_input = x.shape[1] == ni_p
    if not item_padded_input:
        assert x.shape[1] == num_items, "x last dim must be num_items"
        if ni_p != num_items:
            # TODO(synk): keep the item axis 128-padded upstream to avoid this
            # extra HBM round trip on non-aligned item catalogs.
            x = jnp.pad(x, ((0, 0), (0, ni_p - num_items)))

    # --- batch tile selection -------------------------------------------------
    # Biggest multiple of 8 whose double-buffered x+out (f32) fits the I/O VMEM
    # budget, capped at max_batch_tile.  No wrapper-side batch padding: the grid
    # uses cdiv and Pallas masks the ragged last block.
    bytes_per_row = 2 * 2 * ni_p * 4          # 2 buffers x (x + out) x f32
    tb_cap = max(8, (io_vmem_budget_bytes // bytes_per_row) // 8 * 8)
    tb = min(max_batch_tile, tb_cap, _round_up(B, 8))
    # Guarantee >=2 grid steps when there is enough work so v7x megacore splits
    # the batch axis across both TensorCores.
    if B >= 16 and pl.cdiv(B, tb) < 2:
        tb = max(8, _round_up(pl.cdiv(B, 2), 8))
    grid = (pl.cdiv(B, tb),)

    # Only raise the scoped-VMEM limit if the tile wouldn't fit v5e's 16 MiB
    # default (weights/biases are tiny: ~2*ni_p*hidden*4 bytes).
    io_bytes = 2 * 2 * tb * ni_p * 4
    vmem_limit = None
    if io_bytes > (12 << 20):
        vmem_limit = int(min(io_bytes + (4 << 20), 48 << 20))

    flops = 2 * B * ni_p * hidden * 2                     # two matmuls
    bytes_accessed = (
        B * ni_p * (x.dtype.itemsize + 4)                 # x in + out (f32)
        + 4 * (2 * ni_p * hidden + hidden + ni_p)         # weights + biases
    )

    out = pl.pallas_call(
        _autoencoder_kernel,
        out_shape=jax.ShapeDtypeStruct((B, ni_p), jnp.float32),
        grid=grid,
        in_specs=[
            pl.BlockSpec((tb, ni_p), lambda i: (i, 0)),        # x tile streams
            pl.BlockSpec((ni_p, hidden), lambda i: (0, 0)),    # W1 resident
            pl.BlockSpec((1, hidden), lambda i: (0, 0)),       # b1 resident
            pl.BlockSpec((hidden, ni_p), lambda i: (0, 0)),    # W2 resident
            pl.BlockSpec((1, ni_p), lambda i: (0, 0)),         # b2 resident
        ],
        out_specs=pl.BlockSpec((tb, ni_p), lambda i: (i, 0)),
        compiler_params=pltpu.CompilerParams(
            dimension_semantics=("parallel",),
            vmem_limit_bytes=vmem_limit,
        ),
        cost_estimate=pl.CostEstimate(
            flops=flops, bytes_accessed=bytes_accessed, transcendentals=0
        ),
    )(x, w1, b1, w2, b2)

    if ni_p != num_items and not item_padded_input:
        out = out[:, :num_items]
    return out


def _torch_linear_init(key, out_features, in_features):
    """Deterministic init matching torch.nn.Linear's U(-1/sqrt(in), 1/sqrt(in))."""
    bound = 1.0 / jnp.sqrt(jnp.float32(in_features))
    kw, kb = jax.random.split(key)
    w = jax.random.uniform(kw, (out_features, in_features), jnp.float32, -bound, bound)
    b = jax.random.uniform(kb, (out_features,), jnp.float32, -bound, bound)
    return w, b


if __name__ == "__main__":
    # Small shapes consistent with the module: a per-user ratings vector of
    # length num_items -> Linear(num_items,hidden) -> relu ->
    # Linear(hidden,num_items) -> relu.
    num_items = 256
    hidden_layer_features = 32

    key = jax.random.PRNGKey(0)
    k_x, k_x2, k_enc, k_dec = jax.random.split(key, 4)

    w_enc, b_enc = _torch_linear_init(k_enc, hidden_layer_features, num_items)
    w_dec, b_dec = _torch_linear_init(k_dec, num_items, hidden_layer_features)

    # One-time parameter prep (hoisted out of the forward path).
    params = prepare_params(w_enc, b_enc, w_dec, b_dec)
    params = jax.tree_util.tree_map(
        lambda v: jax.block_until_ready(v) if isinstance(v, jax.Array) else v, params
    )

    def reference(x):
        code = jnp.maximum(x @ w_enc.T + b_enc, 0.0)
        return jnp.maximum(code @ w_dec.T + b_dec, 0.0)

    # Case 1: tile-aligned batch.
    batch = 8
    x = jax.random.uniform(k_x, (batch, num_items), jnp.float32, 0.0, 5.0)
    out = jax.block_until_ready(expl_autoencoder_forward(x, params))
    assert out.shape == (batch, num_items)
    assert jnp.allclose(out, reference(x), atol=1e-5, rtol=1e-5)

    # Case 2: ragged batch (exercises the masked last block + >=2 grid steps).
    batch2 = 20
    x2 = jax.random.uniform(k_x2, (batch2, num_items), jnp.float32, 0.0, 5.0)
    out2 = jax.block_until_ready(expl_autoencoder_forward(x2, params))
    assert out2.shape == (batch2, num_items)
    assert jnp.allclose(out2, reference(x2), atol=1e-5, rtol=1e-5)

    print("KERNEL_OK")
</pallas_src>

<mosaic_0001>
module attributes {stable_mosaic.version = 11 : i64} {
  func.func @_autoencoder_kernel(%arg0: i32, %arg1: memref<8x256xf32, #tpu.memory_space<vmem>>, %arg2: memref<256x32xf32, #tpu.memory_space<vmem>>, %arg3: memref<1x32xf32, #tpu.memory_space<vmem>>, %arg4: memref<32x256xf32, #tpu.memory_space<vmem>>, %arg5: memref<1x256xf32, #tpu.memory_space<vmem>>, %arg6: memref<8x256xf32, #tpu.memory_space<vmem>>) attributes {dimension_semantics = [#tpu.dimension_semantics<parallel>], iteration_bounds = array<i64: 1>, scalar_prefetch = 0 : i64, scratch_operands = 0 : i64, tpu.core_type = #tpu.core_type<tc>, window_params = [{transform_indices = @transform_0, window_bounds = array<i64: 8, 256>}, {pipeline_mode = #tpu.pipeline_mode<synchronous>, transform_indices = @transform_1, window_bounds = array<i64: 256, 32>}, {pipeline_mode = #tpu.pipeline_mode<synchronous>, transform_indices = @transform_2, window_bounds = array<i64: 1, 32>}, {pipeline_mode = #tpu.pipeline_mode<synchronous>, transform_indices = @transform_3, window_bounds = array<i64: 32, 256>}, {pipeline_mode = #tpu.pipeline_mode<synchronous>, transform_indices = @transform_4, window_bounds = array<i64: 1, 256>}, {transform_indices = @transform_5, window_bounds = array<i64: 8, 256>}]} {
    %c0 = arith.constant 0 : index
    %c0_0 = arith.constant 0 : index
    %0 = vector.load %arg1[%c0, %c0_0] : memref<8x256xf32, #tpu.memory_space<vmem>>, vector<8x256xf32>
    %c0_1 = arith.constant 0 : index
    %c0_2 = arith.constant 0 : index
    %1 = vector.load %arg2[%c0_1, %c0_2] : memref<256x32xf32, #tpu.memory_space<vmem>>, vector<256x32xf32>
    %cst = arith.constant dense<0.000000e+00> : vector<8x32xf32>
    %2 = tpu.matmul %0, %1, %cst {dimension_numbers = #tpu.dot_dimension_numbers<[1], [0], [0], [1], [0, 0, 1, 1], [], []>} : vector<8x256xf32>, vector<256x32xf32>, vector<8x32xf32> -> vector<8x32xf32>
    %c0_3 = arith.constant 0 : index
    %c0_4 = arith.constant 0 : index
    %3 = vector.load %arg3[%c0_3, %c0_4] : memref<1x32xf32, #tpu.memory_space<vmem>>, vector<1x32xf32>
    %4 = vector.broadcast %3 : vector<1x32xf32> to vector<8x32xf32>
    %5 = arith.addf %2, %4 : vector<8x32xf32>
    %cst_5 = arith.constant 0.000000e+00 : f32
    %6 = vector.broadcast %cst_5 : f32 to vector<8x32xf32>
    %7 = arith.maximumf %5, %6 : vector<8x32xf32>
    %c0_6 = arith.constant 0 : index
    %c0_7 = arith.constant 0 : index
    %8 = vector.load %arg4[%c0_6, %c0_7] : memref<32x256xf32, #tpu.memory_space<vmem>>, vector<32x256xf32>
    %cst_8 = arith.constant dense<0.000000e+00> : vector<8x256xf32>
    %9 = tpu.matmul %7, %8, %cst_8 {dimension_numbers = #tpu.dot_dimension_numbers<[1], [0], [0], [1], [0, 0, 1, 1], [], []>} : vector<8x32xf32>, vector<32x256xf32>, vector<8x256xf32> -> vector<8x256xf32>
    %c0_9 = arith.constant 0 : index
    %c0_10 = arith.constant 0 : index
    %10 = vector.load %arg5[%c0_9, %c0_10] : memref<1x256xf32, #tpu.memory_space<vmem>>, vector<1x256xf32>
    %11 = vector.broadcast %10 : vector<1x256xf32> to vector<8x256xf32>
    %12 = arith.addf %9, %11 : vector<8x256xf32>
    %cst_11 = arith.constant 0.000000e+00 : f32
    %13 = vector.broadcast %cst_11 : f32 to vector<8x256xf32>
    %14 = arith.maximumf %12, %13 : vector<8x256xf32>
    %c0_12 = arith.constant 0 : index
    %c0_13 = arith.constant 0 : index
    %15 = vector.load %arg6[%c0_12, %c0_13] : memref<8x256xf32, #tpu.memory_space<vmem>>, vector<8x256xf32>
    tpu.vector_store %arg6[%c0_12, %c0_13], %14 {strides = array<i32>} : memref<8x256xf32, #tpu.memory_space<vmem>>, vector<8x256xf32>,
    return
  }
  func.func @transform_0(%arg0: i32) -> (i32, i32) {
    %c0_i32 = arith.constant 0 : i32
    %c0_i32_0 = arith.constant 0 : i32
    return %arg0, %c0_i32 : i32, i32
  }
  func.func @transform_1(%arg0: i32) -> (i32, i32) {
    %c0_i32 = arith.constant 0 : i32
    %c0_i32_0 = arith.constant 0 : i32
    %c0_i32_1 = arith.constant 0 : i32
    return %c0_i32, %c0_i32_0 : i32, i32
  }
  func.func @transform_2(%arg0: i32) -> (i32, i32) {
    %c0_i32 = arith.constant 0 : i32
    %c0_i32_0 = arith.constant 0 : i32
    %c0_i32_1 = arith.constant 0 : i32
    return %c0_i32, %c0_i32_0 : i32, i32
  }
  func.func @transform_3(%arg0: i32) -> (i32, i32) {
    %c0_i32 = arith.constant 0 : i32
    %c0_i32_0 = arith.constant 0 : i32
    %c0_i32_1 = arith.constant 0 : i32
    return %c0_i32, %c0_i32_0 : i32, i32
  }
  func.func @transform_4(%arg0: i32) -> (i32, i32) {
    %c0_i32 = arith.constant 0 : i32
    %c0_i32_0 = arith.constant 0 : i32
    %c0_i32_1 = arith.constant 0 : i32
    return %c0_i32, %c0_i32_0 : i32, i32
  }
  func.func @transform_5(%arg0: i32) -> (i32, i32) {
    %c0_i32 = arith.constant 0 : i32
    %c0_i32_0 = arith.constant 0 : i32
    return %arg0, %c0_i32 : i32, i32
  }
}

</mosaic_0001>

<bundles_post_ra>
// kernel: tpu_custom_call.1
= control target key start
LH: loop header
LB: loop body
LE: loop exit
PB: predicated region body
PF: predicated region fallthrough
CT: control target
= control target key end

     0   :  { %s474_s0 = inlined_call_operand.vmem [shape: f32[8,256], index: 0, kind: input, shape index: {}]   ;;  %s475_s1 = inlined_call_operand.vmem [shape: f32[256,32], index: 1, kind: input, shape index: {}]   ;;  %s476_s2 = inlined_call_operand.vmem [shape: f32[1,32], index: 2, kind: input, shape index: {}]   ;;  %s477_s3 = inlined_call_operand.vmem [shape: f32[32,256], index: 3, kind: input, shape index: {}]   ;;  %s478_s4 = inlined_call_operand.vmem [shape: f32[1,256], index: 4, kind: input, shape index: {}]   ;;  %s479_s5 = inlined_call_operand.hbm [shape: f32[8,256], index: 5, kind: output, shape index: {}]  }
   0x1   :  { %v54_v0 = vld [vmem:[%s475_s1 + $0xf8] sm:$0xff]  ;;  %v53_v2 = vld [vmem:[%s475_s1 + $0xf0] sm:$0xff]  ;;  %v52_v4 = vld [vmem:[%s475_s1 + $0xe8] sm:$0xff] }
   0x2   :  { %v38_v1 = vld [vmem:[%s475_s1 + $0x78] sm:$0xff]  ;;  %248 = vmatprep.subr.mxu0 %v54_v0  ;;  %v37_v3 = vld [vmem:[%s475_s1 + $0x70] sm:$0xff]  ;;  %v36_v5 = vld [vmem:[%s475_s1 + $0x68] sm:$0xff] }
   0x3   :  { %249 = vmatpush3.msra.mxu0 %v38_v1  ;;  %v51_v6 = vld [vmem:[%s475_s1 + $0xe0] sm:$0xff]  ;;  %v50_v8 = vld [vmem:[%s475_s1 + $0xd8] sm:$0xff]  ;;  %v49_v10 = vld [vmem:[%s475_s1 + $0xd0] sm:$0xff] }
   0x4   :  { %250 = vmatprep.subr.mxu0 %v53_v2  ;;  %v35_v7 = vld [vmem:[%s475_s1 + $0x60] sm:$0xff]  ;;  %v34_v9 = vld [vmem:[%s475_s1 + $0x58] sm:$0xff]  ;;  %v33_v11 = vld [vmem:[%s475_s1 + $0x50] sm:$0xff] }
   0x5   :  { %251 = vmatpush3.msra.mxu0 %v37_v3  ;;  %v48_v12 = vld [vmem:[%s475_s1 + $0xc8] sm:$0xff] }
   0x6   :  { %252 = vmatprep.subr.mxu0 %v52_v4  ;;  %v22_v13 = vld [vmem:[%s474_s0 + $0x8] sm:$0xff] }
   0x7   :  { %253 = vmatpush3.msra.mxu0 %v36_v5  ;;  %v32_v14 = vld [vmem:[%s475_s1 + $0x48] sm:$0xff]  ;;  %126 = vmatprep.mubr.f32.mxu0 %v22_v13 }
   0x8   :  { %254 = vmatprep.subr.mxu0 %v51_v6 }
   0x9   :  { %255 = vmatpush3.msra.mxu0 %v35_v7 }
   0xa   :  { %256 = vmatprep.subr.mxu0 %v50_v8 }
   0xb   :  { %257 = vmatpush3.msra.mxu0 %v34_v9 }
   0xc   :  { %258 = vmatprep.subr.mxu0 %v49_v10 }
   0xd   :  { %10 = vsyncpa [#allocation3], 0  ;;  %259 = vmatpush3.msra.mxu0 %v33_v11  ;;  %v47_v15 = vld [vmem:[%s475_s1 + $0xc0] sm:$0xff]  ;;  %v46_v17 = vld [vmem:[%s475_s1 + $0xb8] sm:$0xff]  ;;  %v307_v42 = vmov 0.0   ;;  %vm153_vm0 = vcmask 261120   ;;  %v143_v49 = vlaneseq }
   0xe   :  { %260 = vmatprep.subr.mxu0 %v48_v12  ;;  %v31_v16 = vld [vmem:[%s475_s1 + $0x40] sm:$0xff]  ;;  %v30_v18 = vld [vmem:[%s475_s1 + $0x38] sm:$0xff]  ;;  %v45_v19 = vld [vmem:[%s475_s1 + $0xb0] sm:$0xff]  ;;  %221 = vmatprep.mubr.f32.mxu1 %v307_v42 }
   0xf   :  { %261 = vmatpush3.msra.mxu0 %v32_v14  ;;  %v29_v20 = vld [vmem:[%s475_s1 + $0x30] sm:$0xff]  ;;  %v44_v21 = vld [vmem:[%s475_s1 + $0xa8] sm:$0xff]  ;;  %v43_v23 = vld [vmem:[%s475_s1 + $0xa0] sm:$0xff]  ;;  %v144_v50 = vshrl.u32 %v143_v49, 7 }
  0x10   :  { %262 = vmatprep.subr.mxu0 %v47_v15  ;;  %v28_v22 = vld [vmem:[%s475_s1 + $0x28] sm:$0xff]  ;;  %v27_v24 = vld [vmem:[%s475_s1 + $0x20] sm:$0xff]  ;;  %v42_v25 = vld [vmem:[%s475_s1 + $0x98] sm:$0xff] }
  0x11   :  { %263 = vmatpush3.msra.mxu0 %v31_v16  ;;  %v26_v26 = vld [vmem:[%s475_s1 + $0x18] sm:$0xff]  ;;  %v41_v27 = vld [vmem:[%s475_s1 + $0x90] sm:$0xff]  ;;  %v40_v29 = vld [vmem:[%s475_s1 + $0x88] sm:$0xff]  ;;  %v145_v51 = vsub.s32 0, %v144_v50  ;;  %v149_v53 = vsub.s32 1, %v144_v50 }
  0x12   :  { %264 = vmatprep.subr.mxu0 %v46_v17  ;;  %v25_v28 = vld [vmem:[%s475_s1 + $0x10] sm:$0xff]  ;;  %v24_v30 = vld [vmem:[%s475_s1 + $0x8] sm:$0xff]  ;;  %v39_v31 = vld [vmem:[%s475_s1 + $0x80] sm:$0xff] }
  0x13   :  { %265 = vmatpush3.msra.mxu0 %v30_v18  ;;  %v23_v32 = vld [vmem:[%s475_s1] sm:$0xff]  ;;  %v140_v34 = vld [vmem:[%s477_s3 + $0x38] sm:$0xff]  ;;  %v139_v35 = vld [vmem:[%s477_s3 + $0x30] sm:$0xff] }
  0x14   :  { %266 = vmatprep.subr.mxu0 %v45_v19  ;;  %v21_v33 = vld [vmem:[%s474_s0] sm:$0xff]  ;;  %181 = vmatprep.subr.mxu1 %v140_v34  ;;  %v138_v36 = vld [vmem:[%s477_s3 + $0x28] sm:$0xff]  ;;  %v136_v38 = vld [vmem:[%s477_s3 + $0x18] sm:$0xff] }
  0x15   :  { %267 = vmatpush3.msra.mxu0 %v29_v20  ;;  %182 = vmatpush1.msra.mxu1 %v139_v35  ;;  %v137_v37 = vld [vmem:[%s477_s3 + $0x20] sm:$0xff]  ;;  %v135_v39 = vld [vmem:[%s477_s3 + $0x10] sm:$0xff]  ;;  %v134_v40 = vld [vmem:[%s477_s3 + $0x8] sm:$0xff] }
  0x16   :  { %268 = vmatprep.subr.mxu0 %v44_v21  ;;  %183 = vmatprep.subr.mxu1 %v138_v36  ;;  %v133_v41 = vld [vmem:[%s477_s3] sm:$0xff] }
  0x17   :  { %269 = vmatpush3.msra.mxu0 %v28_v22  ;;  %184 = vmatpush1.msra.mxu1 %v137_v37  ;;  %v246_v44 = vld [vmem:[%s476_s2] ss:$0 sm:$0xff]  ;;  %s308_s2 = smov [#allocation2]  }
  0x18   :  { %270 = vmatprep.subr.mxu0 %v43_v23  ;;  %185 = vmatprep.subr.mxu1 %v136_v38  ;;  %v141_v52 = vld [vmem:[%s478_s4] sm:$0x3]  ;;  %s238_s3 = sshll.u32 %s308_s2, 4  ;;  %s239_s3 = int_to_ptr.vmem [resolvable:$true] %s238_s3 }
  0x19   :  { %271 = vmatpush3.msra.mxu0 %v27_v24  ;;  %186 = vmatpush1.msra.mxu1 %v135_v39  ;;  %v146_v54 = vrot.slane %v141_v52, %v145_v51  ;;  %v150_v55 = vrot.slane %v141_v52, %v149_v53  ;;  %s285_s29 = scalar_lea.vmem %s239_s3, 256  ;;  %p290_p1 = scmp.lt.s32.totalorder %s239_s3, %s239_s3 }
  0x1a   :  { %272 = vmatprep.subr.mxu0 %v42_v25  ;;  %187 = vmatprep.subr.mxu1 %v134_v40  ;;  %p286_p0 = scmp.ne.s32.totalorder %s239_s3, %s285_s29  ;;  %p291_p2 = scmp.lt.s32.totalorder %s285_s29, %s285_s29 }
  0x1b   :  { %273 = vmatpush3.msra.mxu0 %v26_v26  ;;  %188 = vmatpush1.msra.mxu1 %v133_v41 }
  0x1c   :  { %274 = vmatprep.subr.mxu0 %v41_v27  ;;  %p292_p3 = por %p291_p2, %p290_p1 }
  0x1d   :  { %275 = vmatpush3.msra.mxu0 %v25_v28 }
  0x1e   :  { %276 = vmatprep.subr.mxu0 %v40_v29  ;;  %p293_p4 = pnand %p292_p3, %p286_p0 }
  0x1f   :  { %277 = vmatpush3.msra.mxu0 %v24_v30 }
  0x20   :  { %278 = vmatprep.subr.mxu0 %v39_v31 }
  0x21   :  { %279 = vmatpush3.msra.mxu0 %v23_v32 }
  0x22   :  { %127 = vmatmul.mubr.f32.vlgmr.msra.gmra.mxu0 %v21_v33 }
  0xe2   :  { %v280_v43 = vpop.f32.mrf.mxu0 }
  0xe4   :  { %v281_v45 = vpop.f32.mrf.mxu0 }
  0xe5   :  { %v282_v46 = vadd.f32 %v281_v45, %v280_v43 }
  0xe7   :  { %v129_v47 = vadd.f32 %v282_v46, %v246_v44 }
  0xe9   :  { %v132_v48 = vmax.f32 %v129_v47, 0.0 }
  0xeb   :  { %247 = vmatmul.mubr.msk.f32.vlgmr.msra.gmra.mxu1 %vm153_vm0, %v132_v48 }
 0x1ab   :  { %v223_v56 = vpop.f32.mrf.mxu1 }
 0x1ac   :  { %v224_v57 = vadd.f32 %v223_v56, %v146_v54 }
 0x1ad   :  { %v225_v58 = vpop.f32.mrf.mxu1 }
 0x1ae   :  { %v228_v59 = vmax.f32 %v224_v57, 0.0  ;;  %v226_v60 = vadd.f32 %v225_v58, %v150_v55 }
 0x1b0   :  { %230 = vst [vmem:[#allocation2] sm:$0xff] %v228_v59  ;;  %v229_v61 = vmax.f32 %v226_v60, 0.0 }
 0x1b2   :  { %231 = vst [vmem:[#allocation2 + $0x8] sm:$0xff] %v229_v61 }
 0x1b3   :  { %296 = shalt.err (!%p293_p4)
}
 0x1b4   :  { %241 = dma.vmem_to_hbm [thread:$0]  %s239_s3, 256, %s479_s5, [#allocation3]  }
 0x1b5   :  { %305 = dma.done.wait [#allocation3], 256  }
 0x1b6   :  { %306 = vsyncadd [#allocation3], 4294967040 }
 0x1b7   :  { %245 = vsyncpa [#allocation3], 1 }

</bundles_post_ra>
